<compile_context>
chip_gen: v5e
topology: v5e:2x2
jax: 0.10.0
libtpu: 0.0.40
codegen_flags: <defaults>
</compile_context>

<pallas_src>
import functools

import jax
import jax.numpy as jnp
from jax import lax
from jax.experimental import pallas as pl
from jax.experimental.pallas import tpu as pltpu


def _round_up(x, m):
    return ((x + m - 1) // m) * m


def _pick_tile_rows(n, c, itemsize):
    """Rows per tile.

    Sized so one logits block is ~4 MiB, then capped so the estimated total
    VMEM (2 double-buffered input blocks + ~4x (TN, C) f32 in-kernel
    temporaries) stays well under the 48 MiB limit we request.
    """
    c_lanes = _round_up(c, 128)                       # physical lane width
    target_block_bytes = 4 * 1024 * 1024              # per logits block (input dtype)
    vmem_budget_bytes = 28 * 1024 * 1024              # conservative total estimate

    tn = target_block_bytes // (c_lanes * itemsize)
    per_row_bytes = 2 * c_lanes * itemsize + 4 * c_lanes * 4  # dbl-buf in + f32 temps
    tn = min(tn, vmem_budget_bytes // per_row_bytes)
    tn = max(8, tn - (tn % 8))

    if tn >= n:
        # Keep >= 2 tiles when possible so v7x's two TensorCores both get work.
        if n >= 16:
            half = _round_up(-(-n // 2), 8)
            if half < n:
                return half
        return n
    return int(tn)


def _focal_loss_kernel(logits_ref, targets_ref, out_ref, *,
                       alpha, gamma, n_total, tile_rows, mode, ragged):
    x = logits_ref[...].astype(jnp.float32)            # (TN, C)
    t = targets_ref[...]                                # (TN, 1) int32

    class_ids = lax.broadcasted_iota(jnp.int32, x.shape, 1)
    onehot = class_ids == t                             # (TN, C) bool

    # Numerically-stable log-softmax cross entropy per row.
    row_max = jnp.max(x, axis=1, keepdims=True)                                # (TN, 1)
    # Gather the target logit from the raw x (not from `shifted`) so `shifted`
    # and a masked copy of it are never live at the same time.
    tgt_logit = jnp.sum(jnp.where(onehot, x, 0.0), axis=1, keepdims=True)      # (TN, 1)
    sum_exp = jnp.sum(jnp.exp(x - row_max), axis=1, keepdims=True)             # (TN, 1)

    ce = jnp.log(sum_exp) - (tgt_logit - row_max)       # (TN, 1) == F.cross_entropy(..., 'none')
    pt = jnp.exp(-ce)
    one_minus_pt = 1.0 - pt
    if gamma == 2.0:                                    # common case -> VALU multiply, no pow
        w = one_minus_pt * one_minus_pt
    elif gamma == 1.0:
        w = one_minus_pt
    elif gamma == 0.0:
        w = jnp.ones_like(one_minus_pt)
    else:
        # ce can round slightly negative -> pt marginally > 1 -> negative base
        # would NaN under a non-integer pow; clamp at 0.
        w = jnp.maximum(one_minus_pt, 0.0) ** jnp.float32(gamma)
    # NOTE: alpha applied as a single scalar (matches the PyTorch reference),
    # not a per-class alpha_t.
    focal = jnp.float32(alpha) * w * ce                 # (TN, 1)

    if ragged:
        # Only needed when N % TN != 0 (decided statically in the wrapper).
        pid = pl.program_id(0)
        row_ids = pid * tile_rows + lax.broadcasted_iota(jnp.int32, focal.shape, 0)
        focal = jnp.where(row_ids < n_total, focal, 0.0)

    if mode == "none":
        # Lane-dense store: transpose the per-row column to lane-major.
        out_ref[...] = jnp.transpose(focal).reshape(1, 1, tile_rows)
    else:
        # Per-tile partial sum broadcast into a sublane/lane-dense block.
        out_ref[...] = jnp.full(out_ref.shape, jnp.sum(focal), dtype=jnp.float32)


def focal_loss(logits, targets, *, alpha=0.25, gamma=2.0, reduction="mean",
               tile_rows=None):
    """Pallas TPU implementation of FocalLoss.forward for 2-D logits (N, C)."""
    if logits.ndim != 2:
        raise ValueError("focal_loss expects logits of shape (N, C)")
    n, c = logits.shape
    targets_2d = targets.astype(jnp.int32).reshape(n, 1)

    if tile_rows is None:
        tn = _pick_tile_rows(n, c, jnp.dtype(logits.dtype).itemsize)
    else:
        tn = int(tile_rows)
        tn = n if tn >= n else max(8, tn - tn % 8)

    num_tiles = pl.cdiv(n, tn)
    ragged = (n % tn) != 0

    kernel = functools.partial(
        _focal_loss_kernel,
        alpha=float(alpha), gamma=float(gamma),
        n_total=n, tile_rows=tn,
        mode="none" if reduction == "none" else "partial",
        ragged=ragged,
    )
    in_specs = [
        pl.BlockSpec((tn, c), lambda i: (i, 0)),   # full (unpadded) class dim
        pl.BlockSpec((tn, 1), lambda i: (i, 0)),
    ]
    compiler_params = pltpu.CompilerParams(
        dimension_semantics=("parallel",),
        vmem_limit_bytes=48 * 1024 * 1024,
    )

    if reduction == "none":
        out = pl.pallas_call(
            kernel,
            out_shape=jax.ShapeDtypeStruct((num_tiles, 1, tn), jnp.float32),
            grid_spec=pltpu.PrefetchScalarGridSpec(
                num_scalar_prefetch=0, grid=(num_tiles,),
                in_specs=in_specs,
                out_specs=pl.BlockSpec((1, 1, tn), lambda i: (i, 0, 0)),
            ),
            compiler_params=compiler_params,
        )(logits, targets_2d)
        return out.reshape(-1)[:n]

    if reduction not in ("mean", "sum"):
        raise ValueError(f"unsupported reduction: {reduction!r}")

    out = pl.pallas_call(
        kernel,
        out_shape=jax.ShapeDtypeStruct((num_tiles, 8, 128), jnp.float32),
        grid_spec=pltpu.PrefetchScalarGridSpec(
            num_scalar_prefetch=0, grid=(num_tiles,),
            in_specs=in_specs,
            out_specs=pl.BlockSpec((1, 8, 128), lambda i: (i, 0, 0)),
        ),
        compiler_params=compiler_params,
    )(logits, targets_2d)
    total = jnp.sum(out[:, 0, 0])                 # one partial per tile
    if reduction == "mean":
        return total / jnp.float32(n)             # divide by the GLOBAL N
    return total


if __name__ == "__main__":
    key = jax.random.PRNGKey(0)
    k_logits, k_targets = jax.random.split(key)

    # Small but deliberately awkward shapes: ragged batch (not a multiple of 8)
    # and a non-lane-aligned class count.
    N, C = 20, 40
    logits = jax.random.normal(k_logits, (N, C), dtype=jnp.float32)
    targets = jax.random.randint(k_targets, (N,), 0, C, dtype=jnp.int32)

    # Pure-JAX reference (softmax CE + focal weighting), matches the torch ref.
    log_probs = jax.nn.log_softmax(logits, axis=-1)
    ce_ref = -jnp.take_along_axis(log_probs, targets[:, None], axis=-1)[:, 0]
    pt_ref = jnp.exp(-ce_ref)
    focal_ref = 0.25 * (1.0 - pt_ref) ** 2.0 * ce_ref

    # Force a tiny tile so the multi-tile + ragged-last-tile path is exercised.
    loss_mean = focal_loss(logits, targets, reduction="mean", tile_rows=8)
    loss_sum = focal_loss(logits, targets, reduction="sum", tile_rows=8)
    loss_none = focal_loss(logits, targets, reduction="none", tile_rows=8)
    jax.block_until_ready((loss_mean, loss_sum, loss_none))

    assert jnp.allclose(loss_mean, jnp.mean(focal_ref), rtol=1e-5, atol=1e-5), (
        loss_mean, jnp.mean(focal_ref))
    assert jnp.allclose(loss_sum, jnp.sum(focal_ref), rtol=1e-5, atol=1e-5), (
        loss_sum, jnp.sum(focal_ref))
    assert jnp.allclose(loss_none, focal_ref, rtol=1e-5, atol=1e-5)

    # Automatic tile size path (splits N=20 into two tiles for megacore).
    loss_auto = focal_loss(logits, targets, reduction="mean")
    loss_auto_none = focal_loss(logits, targets, reduction="none")
    jax.block_until_ready((loss_auto, loss_auto_none))
    assert jnp.allclose(loss_auto, jnp.mean(focal_ref), rtol=1e-5, atol=1e-5), (
        loss_auto, jnp.mean(focal_ref))
    assert jnp.allclose(loss_auto_none, focal_ref, rtol=1e-5, atol=1e-5)

    # Non-integer gamma path (generic pow with clamped base).
    loss_g15 = focal_loss(logits, targets, alpha=0.5, gamma=1.5, reduction="mean")
    focal_ref_g15 = 0.5 * jnp.maximum(1.0 - pt_ref, 0.0) ** 1.5 * ce_ref
    jax.block_until_ready(loss_g15)
    assert jnp.allclose(loss_g15, jnp.mean(focal_ref_g15), rtol=1e-5, atol=1e-5), (
        loss_g15, jnp.mean(focal_ref_g15))

    print("KERNEL_OK")
</pallas_src>

<mosaic_0001>
module attributes {stable_mosaic.version = 11 : i64} {
  func.func @_focal_loss_kernel(%arg0: i32, %arg1: memref<8x40xf32, #tpu.memory_space<vmem>>, %arg2: memref<8x1xi32, #tpu.memory_space<vmem>>, %arg3: memref<1x8x128xf32, #tpu.memory_space<vmem>>) attributes {dimension_semantics = [#tpu.dimension_semantics<parallel>], iteration_bounds = array<i64: 3>, scalar_prefetch = 0 : i64, scratch_operands = 0 : i64, tpu.core_type = #tpu.core_type<tc>, window_params = [{transform_indices = @transform_0, window_bounds = array<i64: 8, 40>}, {transform_indices = @transform_1, window_bounds = array<i64: 8, 1>}, {transform_indices = @transform_2, window_bounds = array<i64: 1, 8, 128>}]} {
    %c0 = arith.constant 0 : index
    %c0_0 = arith.constant 0 : index
    %0 = vector.load %arg1[%c0, %c0_0] : memref<8x40xf32, #tpu.memory_space<vmem>>, vector<8x40xf32>
    %c0_1 = arith.constant 0 : index
    %c0_2 = arith.constant 0 : index
    %1 = vector.load %arg2[%c0_1, %c0_2] : memref<8x1xi32, #tpu.memory_space<vmem>>, vector<8x1xi32>
    %2 = tpu.iota {dimensions = array<i32: 1>} : vector<8x40xi32>
    %3 = vector.broadcast %1 : vector<8x1xi32> to vector<8x40xi32>
    %4 = arith.cmpi eq, %2, %3 : vector<8x40xi32>
    %cst = arith.constant dense<0xFF800000> : vector<8xf32>
    %5 = vector.multi_reduction <maximumf>, %0, %cst [1] : vector<8x40xf32> to vector<8xf32>
    %6 = vector.shape_cast %5 : vector<8xf32> to vector<8x1xf32>
    %cst_3 = arith.constant 0.000000e+00 : f32
    %7 = vector.broadcast %cst_3 : f32 to vector<8x40xf32>
    %8 = arith.select %4, %0, %7 : vector<8x40xi1>, vector<8x40xf32>
    %cst_4 = arith.constant dense<0.000000e+00> : vector<8xf32>
    %9 = vector.multi_reduction <add>, %8, %cst_4 [1] : vector<8x40xf32> to vector<8xf32>
    %10 = vector.shape_cast %9 : vector<8xf32> to vector<8x1xf32>
    %11 = vector.broadcast %6 : vector<8x1xf32> to vector<8x40xf32>
    %12 = arith.subf %0, %11 : vector<8x40xf32>
    %13 = math.exp %12 : vector<8x40xf32>
    %cst_5 = arith.constant dense<0.000000e+00> : vector<8xf32>
    %14 = vector.multi_reduction <add>, %13, %cst_5 [1] : vector<8x40xf32> to vector<8xf32>
    %15 = vector.shape_cast %14 : vector<8xf32> to vector<8x1xf32>
    %16 = math.log %15 : vector<8x1xf32>
    %17 = arith.subf %10, %6 : vector<8x1xf32>
    %18 = arith.subf %16, %17 : vector<8x1xf32>
    %cst_6 = arith.constant 0.000000e+00 : f32
    %19 = vector.broadcast %cst_6 : f32 to vector<8x1xf32>
    %20 = arith.subf %19, %18 : vector<8x1xf32>
    %21 = math.exp %20 : vector<8x1xf32>
    %cst_7 = arith.constant 1.000000e+00 : f32
    %22 = vector.broadcast %cst_7 : f32 to vector<8x1xf32>
    %23 = arith.subf %22, %21 : vector<8x1xf32>
    %24 = arith.mulf %23, %23 : vector<8x1xf32>
    %cst_8 = arith.constant 2.500000e-01 : f32
    %25 = vector.broadcast %cst_8 : f32 to vector<8x1xf32>
    %26 = arith.mulf %25, %24 : vector<8x1xf32>
    %27 = arith.mulf %26, %18 : vector<8x1xf32>
    %c8_i32 = arith.constant 8 : i32
    %28 = arith.muli %arg0, %c8_i32 : i32
    %29 = tpu.iota {dimensions = array<i32: 0>} : vector<8x1xi32>
    %30 = vector.broadcast %28 : i32 to vector<8x1xi32>
    %31 = arith.addi %30, %29 : vector<8x1xi32>
    %c20_i32 = arith.constant 20 : i32
    %32 = vector.broadcast %c20_i32 : i32 to vector<8x1xi32>
    %33 = arith.cmpi slt, %31, %32 : vector<8x1xi32>
    %cst_9 = arith.constant 0.000000e+00 : f32
    %34 = vector.broadcast %cst_9 : f32 to vector<8x1xf32>
    %35 = arith.select %33, %27, %34 : vector<8x1xi1>, vector<8x1xf32>
    %36 = vector.shape_cast %35 : vector<8x1xf32> to vector<1x8x1xf32>
    %cst_10 = arith.constant dense<0.000000e+00> : vector<1xf32>
    %37 = vector.multi_reduction <add>, %36, %cst_10 [1, 2] : vector<1x8x1xf32> to vector<1xf32>
    %38 = vector.shape_cast %37 : vector<1xf32> to vector<1x1x1xf32>
    %39 = vector.extract %38[0, 0, 0] : f32 from vector<1x1x1xf32>
    %40 = vector.broadcast %39 : f32 to vector<1x8x128xf32>
    %c0_11 = arith.constant 0 : index
    %c0_12 = arith.constant 0 : index
    %c0_13 = arith.constant 0 : index
    %41 = vector.load %arg3[%c0_11, %c0_12, %c0_13] : memref<1x8x128xf32, #tpu.memory_space<vmem>>, vector<1x8x128xf32>
    tpu.vector_store %arg3[%c0_11, %c0_12, %c0_13], %40 {strides = array<i32>} : memref<1x8x128xf32, #tpu.memory_space<vmem>>, vector<1x8x128xf32>,
    return
  }
  func.func @transform_0(%arg0: i32) -> (i32, i32) {
    %c0_i32 = arith.constant 0 : i32
    %c0_i32_0 = arith.constant 0 : i32
    return %arg0, %c0_i32 : i32, i32
  }
  func.func @transform_1(%arg0: i32) -> (i32, i32) {
    %c0_i32 = arith.constant 0 : i32
    %c0_i32_0 = arith.constant 0 : i32
    return %arg0, %c0_i32 : i32, i32
  }
  func.func @transform_2(%arg0: i32) -> (i32, i32, i32) {
    %c0_i32 = arith.constant 0 : i32
    %c0_i32_0 = arith.constant 0 : i32
    %c0_i32_1 = arith.constant 0 : i32
    return %arg0, %c0_i32, %c0_i32_0 : i32, i32, i32
  }
}

</mosaic_0001>

<bundles_post_ra>
// kernel: tpu_custom_call.1
= control target key start
LH: loop header
LB: loop body
LE: loop exit
PB: predicated region body
PF: predicated region fallthrough
CT: control target
= control target key end

     0   :  { %7 = vsyncpa [#allocation3], 0  ;;  %s528_s0 = inlined_call_operand.vmem [shape: f32[20,40], index: 0, kind: input, shape index: {}]   ;;  %s529_s1 = inlined_call_operand.vmem [shape: s32[20,1], index: 1, kind: input, shape index: {}]   ;;  %s530_s2 = inlined_call_operand.hbm [shape: f32[3,8,128], index: 2, kind: output, shape index: {}]  }
   0x1   :  { %9 = vsyncpa [#allocation3 + $0x1], 0  ;;  %s437_s9 = smov 0   ;;  %s439_s10 = smov 0  }
   0x2   :  { %s441_s11 = smov 0   ;;  %s443_s12 = smov 0  }
   0x3 LB: > { %s458_s13 = sadd.s32 4294967295, %s419_s12   ;;  %s296_s14 = sadd.s32 4294967294, %s419_s12   ;;  %s419_s12 = sphi %s443_s12, %s536_s12   ;;  %s415_s11 = sphi %s441_s11, %s535_s11   ;;  %s411_s10 = sphi %s439_s10, %s534_s10   ;;  %s407_s9 = sphi %s437_s9, %s533_s9  }
   0x4   : > { %s462_s15 = sadd.s32 1, %s419_s12   ;;  %s74_s16 = sadd.s32 1, %s415_s11 }
   0x5   : > { %s71_s17 = ssub.s32 %s419_s12, %s462_s15  ;;  %p84_p0 = scmp.ne.s32.totalorder %s415_s11, %s411_s10 }
   0x6   : > { %p72_p1 = scmp.eq.s32.totalorder %s71_s17, 0  ;;  %p85_p2 = scmp.eq.s32.totalorder %s458_s13, 2 }
   0x7   : > { %p90_p3 = scmp.ne.s32.totalorder %s411_s10, %s407_s9  ;;  %p91_p4 = scmp.eq.s32.totalorder %s296_s14, 2 }
   0x8   : > { %s473_s18 = scalar_select %p72_p1, %s415_s11, %s74_s16  }
   0x9   : > { %p475_p5 = por %p85_p2, %p84_p0  ;;  %p479_p6 = por %p91_p4, %p90_p3 }
   0xa   : > { %p299_p7 = scmp.ge.s32.totalorder %s419_s12, 1  ;;  %p123_p8 = scmp.lt.s32.totalorder %s419_s12, 4 }
   0xc   : > { %p124_p9 = pnand %p299_p7, %p123_p8 }
   0xd   : > { %p148_p10 = scmp.lt.s32.totalorder (!%p124_p9), %s458_s13, 2  ;;  %s303_s29 = sshll.u32 (!%p124_p9), %s458_s13, 3 }
   0xe   : > { %127 = sbr.rel (%p124_p9) target bundleno = 486 (0x1e6), region = 28  ;;  %s145_s30 = sand.u32 (!%p124_p9), 1, %s411_s10  }
   0xf   : > { %s300_s3 = sshll.u32 (!%p124_p9), %s145_s30, 3  ;;  %s220_s6 = scalar_lea.hbm (!%p124_p9), %s530_s2, %s303_s29 }
  0x10   : > { %s147_s7 = scalar_lea.vmem (!%p124_p9), [#allocation2], %s300_s3  ;;  %s210_s16 = scalar_lea.sflag (!%p124_p9), [#allocation3], %s145_s30 }
  0x11   : > { %s222_s8 = sshll.u32 (!%p124_p9), %s147_s7, 4  ;;  %s377_s24 = scalar_lea.hbm (!%p124_p9), %s530_s2, 24  ;;  %s223_s8 = int_to_ptr.vmem [resolvable:$true] %s222_s8 }
  0x13   : > { %v421_v0 = vmov 0   ;;  %s149_s21 = scalar_select %p148_p10, %s458_s13, 2  ;;  %vm164_vm0 = vcmask 326656   ;;  %v158_v9 = vlaneseq  ;;  %v192_v23 = vstv %s303_s29 }
  0x14   : > { %350 = vset.pattern.permute.xlu0 %v421_v0  ;;  %vm196_vm3 = vcmask 7168   ;;  %s224_s13 = sshll.u32 %s220_s6, 4  ;;  %s225_s13 = int_to_ptr.hbm [resolvable:$true] %s224_s13 }
  0x15   : > { %s301_s22 = sshll.u32 %s149_s21, 3  ;;  %v159_v10 = vand.u32 127, %v158_v9  ;;  %v191_v22 = vshrl.u32 %v158_v9, 7  ;;  %s371_s17 = sshra.s32 %s225_s13, 4  ;;  %s372_s17 = int_to_ptr.hbm [resolvable:$true] %s371_s17 }
  0x16   : > { %s151_s25 = scalar_lea.vmem %s528_s0, %s301_s22  ;;  %s155_s28 = scalar_lea.vmem %s529_s1, %s301_s22 }
  0x17   : > { %v156_v1 = vld [vmem:[%s151_s25] sm:$0xff]  ;;  %v193_v26 = vadd.s32 %v192_v23, %v191_v22  ;;  %s373_s21 = scalar_lea.hbm %s372_s17, 8  ;;  %p378_p0 = scmp.lt.s32.totalorder %s372_s17, %s530_s2 }
  0x18   : > { %v165_v2 = vsel %vm164_vm0, %v156_v1, -inf  ;;  %v157_v3 = vld [vmem:[%s155_s28] sm:$0xff]  ;;  %p374_p11 = scmp.ne.s32.totalorder %s372_s17, %s373_s21  ;;  %p379_p1 = scmp.lt.s32.totalorder %s377_s24, %s373_s21 }
  0x19   : > { %166 = vmax.xlane.f32.xlu0 %v165_v2  ;;  %vm194_vm2 = vcmp.lt.s32.totalorder %v193_v26, 20 }
  0x1a   : > { %p375_p12 = pnand %p374_p11, %p475_p5  ;;  %p380_p2 = por %p379_p1, %p378_p0 }
  0x1c   : > { %p376_p13 = pneg %p375_p12 }
  0x1e   : > { %p381_p3 = pnand %p380_p2, %p376_p13 }
  0x2d   : > { %161 = vperm.xlu0 %350, %v157_v3  }
  0x8c   : > { %v167_v4 = vpop.xlane.xlu0 %166 }
  0x8d   : > { %v172_v5 = vsub.f32 %v156_v1, %v167_v4 }
  0x8f   : > { %v173_v6 = vmul.f32 1.442695, %v172_v5 }
  0x91   : > { %351 = vpow2.f32 %v173_v6 }
  0x97   : > { %v352_v7 = vpop.eup %351 }
  0x98   : > { %v175_v8 = vsel %vm164_vm0, %v352_v7, 0.0 }
  0x99   : > { %176 = vadd.xlane.f32.xlu1 %v175_v8 }
  0x9f   : > { %v162_v11 = vpop.permute.xlu0 %161 }
  0xa0   : > { %vm163_vm1 = vcmp.eq.s32.totalorder %v159_v10, %v162_v11 }
  0xa1   : > { %v168_v12 = vsel %vm163_vm1, %v156_v1, 0.0 }
  0xa2   : > { %v169_v13 = vsel %vm164_vm0, %v168_v12, 0.0 }
  0xa3   : > { %170 = vadd.xlane.f32.xlu1 %v169_v13 }
 0x10c   : > { %v177_v14 = vpop.xlane.xlu1 %176 }
 0x10d   : > { %353 = vlog2.f32 %v177_v14 }
 0x113   : > { %v354_v15 = vpop.eup %353 }
 0x114   : > { %v179_v17 = vmul.f32 0.6931472, %v354_v15 }
 0x116   : > { %v171_v16 = vpop.xlane.xlu1 %170 }
 0x117   : > { %v180_v18 = vsub.f32 %v171_v16, %v167_v4 }
 0x119   : > { %v181_v19 = vsub.f32 %v179_v17, %v180_v18 }
 0x11b   : > { %v182_v20 = vsub.f32 0.0, %v181_v19 }
 0x11d   : > { %v183_v21 = vmul.f32 1.442695, %v182_v20 }
 0x11f   : > { %355 = vpow2.f32 %v183_v21 }
 0x125   : > { %v356_v24 = vpop.eup %355 }
 0x126   : > { %v185_v25 = vsub.f32 1.0, %v356_v24 }
 0x128   : > { %v186_v27 = vmul.f32 %v185_v25, %v185_v25 }
 0x12a   : > { %v187_v28 = vmul.f32 0.25, %v186_v27 }
 0x12c   : > { %v188_v29 = vmul.f32 %v187_v28, %v181_v19 }
 0x12e   : > { %v195_v30 = vsel %vm194_vm2, %v188_v29, 0.0 }
 0x12f   : > { %v197_v31 = vsel %vm196_vm3, %v195_v30, 0.0 }
 0x130   : > { %198 = vadd.xlane.f32.xlu2 %v197_v31 }
 0x1a3   : > { %v199_v32 = vpop.xlane.xlu2 %198 }
 0x1a4   : > { %v200_v33 = vrot.slane %v199_v32, 4 }
 0x1a6   : > { %v201_v34 = vadd.f32 %v200_v33, %v199_v32 }
 0x1a8   : > { %v202_v35 = vrot.slane %v201_v34, 2 }
 0x1aa   : > { %v203_v36 = vadd.f32 %v202_v35, %v201_v34 }
 0x1ac   : > { %v204_v37 = vrot.slane %v203_v36, 1 }
 0x1ae   : > { %v205_v38 = vadd.f32 %v204_v37, %v203_v36 }
 0x1b0   : > { %308 = vpush %v205_v38 }
 0x1e1   : > { %s309_s14 = spop %308 }
 0x1e2   : > { %v207_v39 = vstv %s309_s14 }
 0x1e3   : > { %208 = vst [vmem:[%s147_s7] sm:$0xff] %v207_v39 }
 0x1e4   : > { %384 = shalt.err (!%p381_p3)
}
 0x1e5   : > { %310 = dma.vmem_to_hbm [thread:$0]  (%p475_p5), %s223_s8, 128, %s225_s13, %s210_s16  }
 0x1e6 PF: > { %p316_p4 = scmp.ge.s32.totalorder %s419_s12, 2  ;;  %s236_s27 = sand.u32 1, %s407_s9  }
 0x1e7   : > { %s237_s28 = scalar_lea.sflag [#allocation3], %s236_s27 }
 0x1e8   : > { %p313_p7 = pnand %p316_p4, %p479_p6 }
 0x1ea   : > { %p314_p8 = pneg %p313_p7 }
 0x1ec   : > { %402 = dma.done.wait (%p314_p8), %s237_s28, 128  }
 0x1ed   : > { %404 = vsyncadd (%p314_p8), %s237_s28, 4294967168  ;;  %p12_p9 = scmp.ge.s32.totalorder %s462_s15, 5   ;;  %s533_s9 = smov %s411_s10 }
 0x1ee   : > { %s534_s10 = smov %s415_s11  ;;  %s535_s11 = smov %s473_s18 }
 0x1ef   : > { %s536_s12 = smov %s462_s15  ;;  %14 = sbr.rel (!%p12_p9) target bundleno = 3 (0x3), region = 66 }
 0x1f4   :  { %243 = vsyncpa [#allocation3], 1 }
 0x1f5   :  { %245 = vsyncpa [#allocation3 + $0x1], 1 }

</bundles_post_ra>
